<compile_context>
chip_gen: v7x
topology: tpu7x:2x2x1
jax: 0.10.0
libtpu: 0.0.40
codegen_flags: <defaults>
</compile_context>

<pallas_src>
import jax
import jax.numpy as jnp
from jax.experimental import pallas as pl
from jax.experimental.pallas import tpu as pltpu

_LANE = 128
_BIG = 1e30  # padded cluster columns of ||c||^2 -> exp(-...) underflows to 0


def _round_up(n, m):
    return ((n + m - 1) // m) * m


def _cdiv(a, b):
    return -(-a // b)


def _structured_kmeans_kernel(x_ref, ct_ref, cc_ref, dist_ref, prob_ref):
    # x_ref:    [TB, F]      one batch tile (input dtype)
    # ct_ref:   [F, C_pad]   centers pre-transposed in the wrapper (no in-kernel .T)
    # cc_ref:   [1, C_pad]   ||c||^2 precomputed in the wrapper; padded cols = +_BIG
    # dist_ref: [TB, C]      only the real cluster lanes are written back (C <= C_pad)
    # prob_ref: [TB, C]
    c_out = dist_ref.shape[-1]

    x = x_ref[...]
    ct = ct_ref[...]
    cc = cc_ref[...]

    # ||x||^2 in f32 on the VPU; the matmul stays in the input dtype and
    # accumulates in f32 on the MXU.
    x32 = x.astype(jnp.float32)
    xx = jnp.sum(x32 * x32, axis=-1, keepdims=True)               # [TB, 1]
    xc = jnp.dot(x, ct, preferred_element_type=jnp.float32)       # [TB, C_pad]

    # squared L2: ||x||^2 + ||c||^2 - 2 x.c  (padded cols -> ~_BIG)
    d = jnp.maximum(xx + cc - 2.0 * xc, 0.0)

    # softmax(-d) along the lane-dense cluster axis, numerically stable.
    neg = -d
    m = jnp.max(neg, axis=1, keepdims=True)
    e = jnp.exp(neg - m)                      # padded cols become exactly 0
    denom = jnp.sum(e, axis=1, keepdims=True)
    r = pl.reciprocal(denom, approx=True)     # EUP vrcp (free slot next to exp)
    r = r * (2.0 - denom * r)                 # one Newton step -> ~f32 accuracy

    # Store only the real C lanes.  Masked vst costs only bundle slots (plenty of
    # slack in a mem-bound kernel); HBM write bytes drop by C_pad/C.
    dist_ref[...] = d[:, :c_out].astype(dist_ref.dtype)
    prob_ref[...] = (e[:, :c_out] * r).astype(prob_ref.dtype)


def _resident_spec(shape, index_map, nbytes):
    """BlockSpec for a grid-invariant operand.

    Single-buffer it (pl.Buffered(1)) when it is big enough for the extra VMEM
    copy to matter — this mainly protects v7x's 64 MiB VMEM when F*C_pad is
    large.  Falls back to the default spec if pipeline_mode is unsupported.
    """
    if nbytes >= (2 << 20):
        try:
            return pl.BlockSpec(shape, index_map, pipeline_mode=pl.Buffered(1))
        except TypeError:
            pass
    return pl.BlockSpec(shape, index_map)


def structured_kmeans_forward(x, centers, *, block_b=1024):
    """Returns (distances, prob) matching StructuredKMeans.forward."""
    B, F = x.shape
    C, Fc = centers.shape
    assert F == Fc, "feature dims must match"

    x_bytes = x.dtype.itemsize
    out_dtype = x.dtype                 # keep the module's compute dtype
    out_bytes = jnp.dtype(out_dtype).itemsize
    sub = max(8, 32 // x_bytes)         # sublane pack: 8 (f32) / 16 (bf16) / 32 (i8)

    # Cluster axis padded to a lane multiple only for the matmul rhs / softmax
    # intermediates; the outputs stay at width C.
    C_pad = _round_up(C, _LANE)
    # TODO(synk): for very large C (>=256) a cluster-axis grid with online-softmax
    # accumulators would keep centers/outputs from being fully VMEM resident.

    # ---- VMEM budget, clamped to the actual chip (v7x has only 64 MiB). ----
    try:
        vmem_cap = int(pltpu.get_tpu_info().vmem_capacity_bytes)
    except Exception:
        vmem_cap = 64 * 1024 * 1024     # conservative fallback (v7x per-TC)
    vmem_budget = max(16 << 20, min(int(0.80 * vmem_cap), vmem_cap - (8 << 20)))

    ct_nbytes = F * C_pad * x_bytes
    cc_nbytes = C_pad * 4
    resident = 2 * ct_nbytes + 2 * cc_nbytes          # worst case: double-buffered
    per_row = (2 * F * x_bytes                        # x tile, double-buffered
               + 4 * C * out_bytes                    # two outputs, double-buffered
               + 2 * C_pad * 4)                       # headroom for f32 intermediates
    tb_cap = (vmem_budget - resident - (4 << 20)) // per_row
    tb_cap = max(sub, (tb_cap // sub) * sub)

    # ---- Equalized batch tiling: minimal padding, >=2 steps for v7x megacore. --
    block_b_eff = max(sub, min(block_b, tb_cap))
    steps = _cdiv(B, block_b_eff)
    if steps == 1 and B >= 2 * sub:
        steps = 2                       # give both v7x TensorCores a grid step
    TB = _round_up(_cdiv(B, steps), sub)
    steps = _cdiv(B, TB)
    B_pad = steps * TB
    grid = (steps,)

    # ---- Wrapper-side layout plumbing (cheap, one-off). ----
    x_p = x if B_pad == B else jnp.pad(x, ((0, B_pad - B), (0, 0)))
    c32 = centers.astype(jnp.float32)
    ct = jnp.pad(c32, ((0, C_pad - C), (0, 0))).T.astype(x.dtype)       # [F, C_pad]
    cc = jnp.sum(c32 * c32, axis=1)                                     # [C]
    cc = jnp.pad(cc, (0, C_pad - C), constant_values=_BIG).reshape(1, C_pad)

    work_bytes = (2 * TB * F * x_bytes
                  + resident
                  + 4 * TB * C * out_bytes
                  + 2 * TB * C_pad * 4)
    vmem_limit = int(min(vmem_budget, max(4 << 20, 2 * work_bytes)))

    cost = pl.CostEstimate(
        flops=2 * B_pad * C_pad * F + 8 * B_pad * C_pad,
        transcendentals=B_pad * C_pad,
        bytes_accessed=(x_p.size * x_bytes + ct.size * x_bytes + cc.size * 4
                        + 2 * B_pad * C * out_bytes),
    )

    dist, prob = pl.pallas_call(
        _structured_kmeans_kernel,
        grid=grid,
        in_specs=[
            pl.BlockSpec((TB, F), lambda i: (i, 0)),                    # x tile / step
            _resident_spec((F, C_pad), lambda i: (0, 0), ct_nbytes),    # centers^T
            _resident_spec((1, C_pad), lambda i: (0, 0), cc_nbytes),    # ||c||^2
        ],
        out_specs=(
            pl.BlockSpec((TB, C), lambda i: (i, 0)),
            pl.BlockSpec((TB, C), lambda i: (i, 0)),
        ),
        out_shape=(
            jax.ShapeDtypeStruct((B_pad, C), out_dtype),
            jax.ShapeDtypeStruct((B_pad, C), out_dtype),
        ),
        compiler_params=pltpu.CompilerParams(
            dimension_semantics=("parallel",),
            vmem_limit_bytes=vmem_limit,
        ),
        cost_estimate=cost,
    )(x_p, ct, cc)

    if B_pad != B:
        dist, prob = dist[:B], prob[:B]
    return dist, prob


def reference_forward(x, centers):
    # Pure-JAX reference (mirrors torch.cdist(x, c)**2 and softmax(-d, dim=1)).
    d = jnp.sum((x[:, None, :] - centers[None, :, :]) ** 2, axis=-1)
    p = jax.nn.softmax(-d, axis=1)
    return d, p


if __name__ == "__main__":
    key = jax.random.PRNGKey(0)
    kx, kc, kx2, kc2 = jax.random.split(key, 4)

    # Case 1: small shapes consistent with the module.
    B, F, C = 16, 32, 8
    x = jax.random.normal(kx, (B, F), dtype=jnp.float32)
    centers = jax.random.normal(kc, (C, F), dtype=jnp.float32)

    dist, prob = structured_kmeans_forward(x, centers)
    jax.block_until_ready(dist)
    jax.block_until_ready(prob)

    d_ref, p_ref = reference_forward(x, centers)
    assert dist.shape == (B, C) and prob.shape == (B, C)
    assert jnp.allclose(dist, d_ref, atol=1e-3, rtol=1e-3)
    assert jnp.allclose(prob, p_ref, atol=1e-5, rtol=1e-4)
    assert jnp.allclose(jnp.sum(prob, axis=1), 1.0, atol=1e-5)

    # Case 2: exercises equalized batch tiling (B not a tile multiple) and a
    # cluster count that is not a lane multiple.
    B2, F2, C2 = 600, 64, 10
    x2 = jax.random.normal(kx2, (B2, F2), dtype=jnp.float32)
    centers2 = jax.random.normal(kc2, (C2, F2), dtype=jnp.float32)

    dist2, prob2 = structured_kmeans_forward(x2, centers2)
    jax.block_until_ready(dist2)
    jax.block_until_ready(prob2)

    d2_ref, p2_ref = reference_forward(x2, centers2)
    assert dist2.shape == (B2, C2) and prob2.shape == (B2, C2)
    assert jnp.allclose(dist2, d2_ref, atol=1e-3, rtol=1e-3)
    assert jnp.allclose(prob2, p2_ref, atol=1e-5, rtol=1e-4)
    assert jnp.allclose(jnp.sum(prob2, axis=1), 1.0, atol=1e-5)

    print("KERNEL_OK")
</pallas_src>

<mosaic_0001>
module attributes {stable_mosaic.version = 11 : i64} {
  func.func @_structured_kmeans_kernel(%arg0: i32, %arg1: memref<8x32xf32, #tpu.memory_space<vmem>>, %arg2: memref<32x128xf32, #tpu.memory_space<vmem>>, %arg3: memref<1x128xf32, #tpu.memory_space<vmem>>, %arg4: memref<8x8xf32, #tpu.memory_space<vmem>>, %arg5: memref<8x8xf32, #tpu.memory_space<vmem>>) attributes {dimension_semantics = [#tpu.dimension_semantics<parallel>], iteration_bounds = array<i64: 2>, scalar_prefetch = 0 : i64, scratch_operands = 0 : i64, tpu.core_type = #tpu.core_type<tc>, window_params = [{transform_indices = @transform_0, window_bounds = array<i64: 8, 32>}, {pipeline_mode = #tpu.pipeline_mode<synchronous>, transform_indices = @transform_1, window_bounds = array<i64: 32, 128>}, {pipeline_mode = #tpu.pipeline_mode<synchronous>, transform_indices = @transform_2, window_bounds = array<i64: 1, 128>}, {transform_indices = @transform_3, window_bounds = array<i64: 8, 8>}, {transform_indices = @transform_4, window_bounds = array<i64: 8, 8>}]} {
    %c0 = arith.constant 0 : index
    %c0_0 = arith.constant 0 : index
    %0 = vector.load %arg1[%c0, %c0_0] : memref<8x32xf32, #tpu.memory_space<vmem>>, vector<8x32xf32>
    %c0_1 = arith.constant 0 : index
    %c0_2 = arith.constant 0 : index
    %1 = vector.load %arg2[%c0_1, %c0_2] : memref<32x128xf32, #tpu.memory_space<vmem>>, vector<32x128xf32>
    %c0_3 = arith.constant 0 : index
    %c0_4 = arith.constant 0 : index
    %2 = vector.load %arg3[%c0_3, %c0_4] : memref<1x128xf32, #tpu.memory_space<vmem>>, vector<1x128xf32>
    %3 = arith.mulf %0, %0 : vector<8x32xf32>
    %cst = arith.constant dense<0.000000e+00> : vector<8xf32>
    %4 = vector.multi_reduction <add>, %3, %cst [1] : vector<8x32xf32> to vector<8xf32>
    %5 = vector.shape_cast %4 : vector<8xf32> to vector<8x1xf32>
    %cst_5 = arith.constant dense<0.000000e+00> : vector<8x128xf32>
    %6 = tpu.matmul %0, %1, %cst_5 {dimension_numbers = #tpu.dot_dimension_numbers<[1], [0], [0], [1], [0, 0, 1, 1], [], []>} : vector<8x32xf32>, vector<32x128xf32>, vector<8x128xf32> -> vector<8x128xf32>
    %7 = vector.broadcast %5 : vector<8x1xf32> to vector<8x128xf32>
    %8 = vector.broadcast %2 : vector<1x128xf32> to vector<8x128xf32>
    %9 = arith.addf %7, %8 : vector<8x128xf32>
    %cst_6 = arith.constant 2.000000e+00 : f32
    %10 = vector.broadcast %cst_6 : f32 to vector<8x128xf32>
    %11 = arith.mulf %10, %6 : vector<8x128xf32>
    %12 = arith.subf %9, %11 : vector<8x128xf32>
    %cst_7 = arith.constant 0.000000e+00 : f32
    %13 = vector.broadcast %cst_7 : f32 to vector<8x128xf32>
    %14 = arith.maximumf %12, %13 : vector<8x128xf32>
    %cst_8 = arith.constant 0.000000e+00 : f32
    %15 = vector.broadcast %cst_8 : f32 to vector<8x128xf32>
    %16 = arith.subf %15, %14 : vector<8x128xf32>
    %cst_9 = arith.constant dense<0xFF800000> : vector<8xf32>
    %17 = vector.multi_reduction <maximumf>, %16, %cst_9 [1] : vector<8x128xf32> to vector<8xf32>
    %18 = vector.shape_cast %17 : vector<8xf32> to vector<8x1xf32>
    %19 = vector.broadcast %18 : vector<8x1xf32> to vector<8x128xf32>
    %20 = arith.subf %16, %19 : vector<8x128xf32>
    %21 = math.exp %20 : vector<8x128xf32>
    %cst_10 = arith.constant dense<0.000000e+00> : vector<8xf32>
    %22 = vector.multi_reduction <add>, %21, %cst_10 [1] : vector<8x128xf32> to vector<8xf32>
    %23 = vector.shape_cast %22 : vector<8xf32> to vector<8x1xf32>
    %24 = tpu.reciprocal %23 {approx = true} : vector<8x1xf32> -> vector<8x1xf32>
    %25 = arith.mulf %23, %24 : vector<8x1xf32>
    %cst_11 = arith.constant 2.000000e+00 : f32
    %26 = vector.broadcast %cst_11 : f32 to vector<8x1xf32>
    %27 = arith.subf %26, %25 : vector<8x1xf32>
    %28 = arith.mulf %24, %27 : vector<8x1xf32>
    %29 = vector.extract_strided_slice %14 {offsets = [0, 0], sizes = [8, 8], strides = [1, 1]} : vector<8x128xf32> to vector<8x8xf32>
    %c0_12 = arith.constant 0 : index
    %c0_13 = arith.constant 0 : index
    %30 = vector.load %arg4[%c0_12, %c0_13] : memref<8x8xf32, #tpu.memory_space<vmem>>, vector<8x8xf32>
    tpu.vector_store %arg4[%c0_12, %c0_13], %29 {strides = array<i32>} : memref<8x8xf32, #tpu.memory_space<vmem>>, vector<8x8xf32>,
    %31 = vector.extract_strided_slice %21 {offsets = [0, 0], sizes = [8, 8], strides = [1, 1]} : vector<8x128xf32> to vector<8x8xf32>
    %32 = vector.broadcast %28 : vector<8x1xf32> to vector<8x8xf32>
    %33 = arith.mulf %31, %32 : vector<8x8xf32>
    %c0_14 = arith.constant 0 : index
    %c0_15 = arith.constant 0 : index
    %34 = vector.load %arg5[%c0_14, %c0_15] : memref<8x8xf32, #tpu.memory_space<vmem>>, vector<8x8xf32>
    tpu.vector_store %arg5[%c0_14, %c0_15], %33 {strides = array<i32>} : memref<8x8xf32, #tpu.memory_space<vmem>>, vector<8x8xf32>,
    return
  }
  func.func @transform_0(%arg0: i32) -> (i32, i32) {
    %c0_i32 = arith.constant 0 : i32
    %c0_i32_0 = arith.constant 0 : i32
    return %arg0, %c0_i32 : i32, i32
  }
  func.func @transform_1(%arg0: i32) -> (i32, i32) {
    %c0_i32 = arith.constant 0 : i32
    %c0_i32_0 = arith.constant 0 : i32
    %c0_i32_1 = arith.constant 0 : i32
    return %c0_i32, %c0_i32_0 : i32, i32
  }
  func.func @transform_2(%arg0: i32) -> (i32, i32) {
    %c0_i32 = arith.constant 0 : i32
    %c0_i32_0 = arith.constant 0 : i32
    %c0_i32_1 = arith.constant 0 : i32
    return %c0_i32, %c0_i32_0 : i32, i32
  }
  func.func @transform_3(%arg0: i32) -> (i32, i32) {
    %c0_i32 = arith.constant 0 : i32
    %c0_i32_0 = arith.constant 0 : i32
    return %arg0, %c0_i32 : i32, i32
  }
  func.func @transform_4(%arg0: i32) -> (i32, i32) {
    %c0_i32 = arith.constant 0 : i32
    %c0_i32_0 = arith.constant 0 : i32
    return %arg0, %c0_i32 : i32, i32
  }
}

</mosaic_0001>

<bundles_post_ra>
// kernel: tpu_custom_call.1
= control target key start
LH: loop header
LB: loop body
LE: loop exit
PB: predicated region body
PF: predicated region fallthrough
CT: control target
= control target key end

     0   :  { %10 = vsyncpa [#allocation3], 0  ;;  %s828_s0 = inlined_call_operand.hbm [shape: f32[16,32], index: 0, kind: input, shape index: {}]   ;;  %s829_s1 = inlined_call_operand.hbm [shape: f32[32,128], index: 1, kind: input, shape index: {}]   ;;  %s830_s2 = inlined_call_operand.vmem [shape: f32[1,128], index: 2, kind: input, shape index: {}]   ;;  %s831_s3 = inlined_call_operand.vmem [shape: f32[16,8], index: 3, kind: output, shape index: {0}]   ;;  %s832_s4 = inlined_call_operand.vmem [shape: f32[16,8], index: 4, kind: output, shape index: {1}]  }
   0x1   :  { %12 = vsyncpa [#allocation3 + $0x1], 0 }
   0x2   :  { %13 = vsyncpa [#allocation5], 0  ;;  %s681_s15 = smov 0   ;;  %s683_s16 = smov 0  }
   0x3   :  { %s685_s17 = smov 0   ;;  %s687_s18 = smov 0  }
   0x4 LB: > { %s700_s19 = sadd.s32 4294967295, %s647_s18   ;;  %p39_p0 = scmp.ne.s32.totalorder %s639_s16, %s635_s15  ;;  %s647_s18 = sphi %s687_s18, %s847_s18   ;;  %s643_s17 = sphi %s685_s17, %s846_s17   ;;  %s639_s16 = sphi %s683_s16, %s845_s16   ;;  %s635_s15 = sphi %s681_s15, %s844_s15  }
   0x5   : > { %p833_p1 = scmp.eq.s32.totalorder %s700_s19, 0  ;;  %p456_p2 = scmp.ge.s32.totalorder %s647_s18, 1 }
   0x6   : > { %p144_p3 = scmp.lt.s32.totalorder %s647_s18, 3  ;;  %s649_s22 = smov [#allocation4]  }
   0x7   : > { %p708_p4 = por %p833_p1, %p39_p0  ;;  %s156_s23 = sshll.u32 %s649_s22, 4  ;;  %s157_s23 = int_to_ptr.vmem [resolvable:$true] %s156_s23 }
   0x8   : > { %p712_p5 = pnand %p456_p2, %p144_p3  ;;  %s725_s25 = sadd.s32 1, %s647_s18  }
   0x9   : > { %s836_s20 = scalar_select %p708_p4, 1, 0 }
   0xa   : > { %s837_s21 = scalar_select %p712_p5, 1, 0 }
   0xb   : > { %p498_p6 = pneg %p712_p5  ;;  %s26_s26 = sadd.s32 1, %s643_s17 }
   0xc   : > { %s23_s27 = ssub.s32 %s647_s18, %s725_s25  ;;  %s551_s30 = scalar_lea.hbm %s829_s1, 512 }
   0xd   : > { %p720_p7 = pnand %p498_p6, %p833_p1  ;;  %p552_p8 = scmp.ne.s32.totalorder %s829_s1, %s551_s30 }
   0xe   : > { %p558_p12 = scmp.lt.u32.totalorder %s551_s30, %s829_s1 }
   0xf   : > { %p553_p9 = pneg %p720_p7 }
  0x11   : > { %p554_p10 = pnand %p553_p9, %p552_p8 }
  0x13   : > { %p555_p11 = pneg %p554_p10 }
  0x15   : > { %p560_p13 = pnand %p558_p12, %p555_p11 }
  0x17   : > { %563 = shalt.err (!%p560_p13)
}
  0x18   : > { %s564_s9 = scalar_lea.vmem %s157_s23, 512  ;;  %p572_p6 = scmp.lt.s32.totalorder %s157_s23, %s157_s23 }
  0x19   : > { %p565_p0 = scmp.ne.s32.totalorder %s157_s23, %s564_s9  ;;  %p573_p1 = scmp.lt.s32.totalorder %s564_s9, %s564_s9 }
  0x1b   : > { %p567_p2 = pnand %p565_p0, %p553_p9  ;;  %p574_p4 = por %p573_p1, %p572_p6 }
  0x1d   : > { %p568_p3 = pneg %p567_p2 }
  0x1f   : > { %p575_p5 = pnand %p574_p4, %p568_p3 }
  0x21   : > { %578 = shalt.err (!%p575_p5)
}
  0x22   : > { %s650_s10 = smov 128   ;;  %s651_s11 = smov 8  }
  0x23   : > { %501 = dma.hbm_to_vmem [thread:$0]  (!%p720_p7), %s829_s1, 512, %s157_s23, [#allocation5], %s650_s10, %s650_s10, %s651_s11  }
  0x24   : > { %p24_p8 = scmp.eq.s32.totalorder %s23_s27, 0  ;;  %p33_p9 = scmp.ne.s32.totalorder %s643_s17, %s639_s16 }
  0x25   : > { %p34_p1 = scmp.eq.s32.totalorder %s647_s18, 0  ;;  %p507_p4 = scmp.lt.s32.totalorder %s647_s18, 2 }
  0x26   : > { %s751_s14 = scalar_select %p24_p8, %s643_s17, %s26_s26  }
  0x27   : > { %p35_p5 = por %p34_p1, %p33_p9  ;;  %s173_s15 = sand.u32 1, %s643_s17  }
  0x28   : > { %s459_s22 = sshll.u32 %s173_s15, 3  ;;  %s460_s28 = sshll.u32 %s647_s18, 7 }
  0x29   : > { %s758_s5 = scalar_lea.hbm %s828_s0, %s460_s28  ;;  %s177_s23 = scalar_lea.vmem [#allocation2], %s459_s22 }
  0x2a   : > { %s184_s24 = sshll.u32 %s177_s23, 4  ;;  %p762_p7 = pnand %p507_p4, %p35_p5  ;;  %s760_s24 = int_to_ptr.vmem [resolvable:$true] %s184_s24 }
  0x2b   : > { %s174_s18 = scalar_lea.sflag [#allocation3], %s173_s15  ;;  %s579_s27 = scalar_lea.hbm %s758_s5, 128 }
  0x2c   : > { %p580_p10 = scmp.ne.s32.totalorder %s758_s5, %s579_s27  ;;  %p581_p11 = pneg %p762_p7 }
  0x2d   : > { %s584_s8 = scalar_lea.hbm %s828_s0, 256  ;;  %p585_p0 = scmp.lt.u32.totalorder %s758_s5, %s828_s0 }
  0x2e   : > { %p582_p12 = pnand %p581_p11, %p580_p10  ;;  %p586_p2 = scmp.lt.u32.totalorder %s584_s8, %s579_s27 }
  0x2f   : > { %p588_p6 = scmp.lt.u32.totalorder %s579_s27, %s758_s5 }
  0x30   : > { %p583_p13 = pneg %p582_p12  ;;  %p587_p3 = por %p586_p2, %p585_p0 }
  0x32   : > { %p589_p8 = por %p588_p6, %p587_p3 }
  0x34   : > { %p590_p9 = pnand %p589_p8, %p583_p13 }
  0x36   : > { %593 = shalt.err (!%p590_p9)
}
  0x37   : > { %s594_s11 = scalar_lea.vmem %s760_s24, 128  ;;  %s652_s12 = smov [#allocation2]  }
  0x38   : > { %p595_p1 = scmp.ne.s32.totalorder %s760_s24, %s594_s11  ;;  %s599_s13 = sshll.u32 %s652_s12, 4  ;;  %s600_s13 = int_to_ptr.vmem [resolvable:$false] %s599_s13 }
  0x39   : > { %s601_s15 = scalar_lea.vmem %s600_s13, 256  ;;  %p602_p10 = scmp.lt.s32.totalorder %s760_s24, %s600_s13 }
  0x3a   : > { %p597_p4 = pnand %p595_p1, %p581_p11  ;;  %p603_p12 = scmp.lt.s32.totalorder %s601_s15, %s594_s11 }
  0x3c   : > { %p598_p5 = pneg %p597_p4  ;;  %p604_p0 = por %p603_p12, %p602_p10 }
  0x3e   : > { %p605_p2 = pnand %p604_p0, %p598_p5 }
  0x40   : > { %608 = shalt.err (!%p605_p2)
}
  0x41   : > { %505 = dma.hbm_to_vmem [thread:$0]  (!%p762_p7), %s758_s5, 128, %s760_s24, %s174_s18  }
  0x42   : > { %p840_p13 = scmp.ne.s32.totalorder %s837_s21, 0 }
  0x43   : > { %s195_s22 = sand.u32 (!%p840_p13), 1, %s639_s16   ;;  %p841_p11 = scmp.ne.s32.totalorder (!%p840_p13), %s836_s20, 0 }
  0x44   : > { %193 = sbr.rel (%p840_p13) target bundleno = 628 (0x274), region = 32  ;;  %s462_s28 = sshll.u32 (!%p840_p13), %s195_s22, 3 }
  0x45   : > { %s196_s29 = scalar_lea.sflag (!%p840_p13), [#allocation3], %s195_s22  ;;  %s199_s30 = scalar_lea.vmem (!%p840_p13), [#allocation2], %s462_s28 }
  0x4b   : > { %626 = dma.done.wait (%p841_p11), %s196_s29, 128  }
  0x4c   : > { %628 = vsyncadd (%p841_p11), %s196_s29, 4294967168  ;;  %p842_p3 = scmp.eq.s32.totalorder %s700_s19, 0 }
  0x4e   : > { %630 = dma.done.wait (%p842_p3), [#allocation5], 512   ;;  %p843_p6 = pmov %p842_p3 }
  0x4f   : > { %v653_v0 = vmov 0.0|0.0   ;;  %vm654_vm0 = vmmov 0   ;;  %v655_v1 = vmov 0.0   ;;  %v240_v2 = vld [vmem:[#allocation4] sm:$0xff]  ;;  %v241_v3 = vld [vmem:[#allocation4 + $0x8] sm:$0xff]  ;;  %v242_v4 = vld [vmem:[#allocation4 + $0x10] sm:$0xff] }
  0x50   : > { %632 = vsyncadd (%p843_p6), [#allocation5], 4294966784  ;;  %486 = vmatprep.subr.bf16.mxu0 %v653_v0  ;;  %483 = vmatprep.mubr.msk.f32.mxu0 %vm654_vm0, %v655_v1  ;;  %v487_v5 = vpack.c.bf16 %v241_v3, %v240_v2  ;;  %v243_v6 = vld [vmem:[#allocation4 + $0x18] sm:$0xff]  ;;  %vm246_vm1 = vcmask 261120   ;;  %p231_p7 = scmp.lt.s32.totalorder %s700_s19, 1  ;;  %vm345_vm2 = vcmask 64512  }
  0x51   : > { %v239_v7 = vld [vmem:[%s199_s30] sm:$0xff]  ;;  %v490_v9 = vpack.c.bf16 %v243_v6, %v242_v4 }
  0x52   : > { %v245_v8 = vmul.f32 %v239_v7, %v239_v7  ;;  %488 = vmatpush3.bf16.msra.mxu0 %v487_v5  ;;  %v467_v11 = vld [vmem:[%s830_s2] ss:$0 sm:$0xff]  ;;  %s849_s19 = smov (!%p231_p7, %s700_s19), 1 }
  0x53   : > { %489 = vmatprep.subr.bf16.mxu0 %v653_v0  ;;  %s464_s5 = sshll.u32 %s849_s19, 3 }
  0x54   : > { %v247_v10 = vsel %vm246_vm1, %v245_v8, 0.0  ;;  %s234_s26 = scalar_lea.vmem %s831_s3, %s464_s5  ;;  %s238_s27 = scalar_lea.vmem %s832_s4, %s464_s5 }
  0x55   : > { %248 = vadd.xlane.f32.xlu0 %v247_v10 }
  0x56   : > { %491 = vmatpush3.bf16.msra.mxu0 %v490_v9 }
  0x59   : > { %484 = vmatmul.mubr.msk.f32.vlgmr.msra.gmra.mrb[0].mxu0 %vm246_vm1, %v239_v7 }
  0xe2   : > { %v249_v12 = vpop.xlane.xlu0 %248 }
  0xe3   : > { %v329_v13 = vadd.f32 %v467_v11, %v249_v12 }
 0x12c   : > { %v319_v14 = vpop.f32.mrb[0].mxu0 }
 0x12d   : > { %v330_v15 = vmul.f32 2.0, %v319_v14  ;;  %v485_v16 = vpop.f32.mrb[1].mxu0 }
 0x12f   : > { %v331_v17 = vsub.f32 %v329_v13, %v330_v15 }
 0x131   : > { %v332_v18 = vmax.f32 %v331_v17, 0.0 }
 0x133   : > { %346 = vst.msk [vmem:[%s234_s26] sm:$0xff] %vm345_vm2, %v332_v18  ;;  %v333_v19 = vsub.f32 0.0, %v332_v18 }
 0x135   : > { %334 = vmax.xlane.f32.xlu0 %v333_v19 }
 0x1c2   : > { %v335_v20 = vpop.xlane.xlu0 %334 }
 0x1c3   : > { %v336_v21 = vsub.f32 %v333_v19, %v335_v20 }
 0x1c5   : > { %v337_v22 = vmul.f32 1.442695, %v336_v21 }
 0x1c7   : > { %547 = vpow2.f32 %v337_v22 }
 0x1d1   : > { %v548_v23 = vpop.eup %547 }
 0x1d2   : > { %339 = vadd.xlane.f32.xlu1 %v548_v23 }
 0x25f   : > { %v340_v24 = vpop.xlane.xlu1 %339 }
 0x260   : > { %549 = vrcp.f32 %v340_v24 }
 0x26a   : > { %v550_v25 = vpop.eup %549 }
 0x26b   : > { %v342_v26 = vmul.f32 %v550_v25, %v340_v24 }
 0x26d   : > { %v343_v27 = vsub.f32 2.0, %v342_v26 }
 0x26f   : > { %v344_v28 = vmul.f32 %v550_v25, %v343_v27 }
 0x271   : > { %v347_v29 = vmul.f32 %v548_v23, %v344_v28 }
 0x273   : > { %348 = vst.msk [vmem:[%s238_s27] sm:$0xff] %vm345_vm2, %v347_v29 }
 0x274 PF: > { %p16_p8 = scmp.ge.s32.totalorder %s725_s25, 4   ;;  %s844_s15 = smov %s639_s16 }
 0x275   : > { %s845_s16 = smov %s643_s17  ;;  %s846_s17 = smov %s751_s14 }
 0x276   : > { %s847_s18 = smov %s725_s25  ;;  %18 = sbr.rel (!%p16_p8) target bundleno = 4 (0x4), region = 88 }
 0x27d   :  { %382 = vsyncpa [#allocation3], 1 }
 0x27e   :  { %384 = vsyncpa [#allocation3 + $0x1], 1 }
 0x27f   :  { %385 = vsyncpa [#allocation5], 1 }

</bundles_post_ra>
